<compile_context>
chip_gen: v7x
topology: tpu7x:2x2x1
jax: 0.10.0
libtpu: 0.0.40
codegen_flags: <defaults>
</compile_context>

<pallas_src>
import math
from functools import partial

import jax
import jax.numpy as jnp
from jax.experimental import pallas as pl
from jax.experimental.pallas import tpu as pltpu

EXPAND = 1  # matches `expand = 1` in the reference file
_INV_SQRT_24 = 1.0 / (24.0 ** 0.5)


def _round_up(x, m):
    return ((x + m - 1) // m) * m


def _pick_tile_b(B):
    b128 = _round_up(max(B, 1), 128)
    if b128 <= 512:
        return b128  # single small tile (chunk == tile)
    # >= 2 grid steps when possible (v7x has 2 TCs sharded over the batch axis),
    # tiles a multiple of 512 lanes (chunk size), capped at 16384 lanes
    # (~1.6 MB per input block -> ~6.3 MB double-buffered, fits every gen).
    half = _round_up((b128 + 1) // 2, 512)
    return min(16384, half)


def _make_kernel(tile_b, chunk):
    """Kernel over one (4, 6, tile_b) pre/tar block -> (1, tile_b) loss slab."""
    n_chunks = tile_b // chunk
    amp = 3.0 * EXPAND

    def kernel(pre_ref, tar_ref, out_ref):
        # pre_ref / tar_ref: (member=4, group=6, tile_b); out_ref: (1, tile_b).
        def body(c, carry):
            c0 = pl.multiple_of(c * chunk, chunk)  # lane-aligned chunk start

            p0 = pre_ref[0, :, pl.ds(c0, chunk)].astype(jnp.float32)
            p1 = pre_ref[1, :, pl.ds(c0, chunk)].astype(jnp.float32)
            p2 = pre_ref[2, :, pl.ds(c0, chunk)].astype(jnp.float32)
            p3 = pre_ref[3, :, pl.ds(c0, chunk)].astype(jnp.float32)

            # Grouped softmax over the 4 members: elementwise over (6, chunk).
            m = jnp.maximum(jnp.maximum(p0, p1), jnp.maximum(p2, p3))
            e0 = jnp.exp(p0 - m)
            e1 = jnp.exp(p1 - m)
            e2 = jnp.exp(p2 - m)
            e3 = jnp.exp(p3 - m)
            s = (e0 + e1) + (e2 + e3)

            # EUP approximate reciprocal + one Newton step (stays within 1e-5).
            r = pl.reciprocal(s, approx=True)
            r = r * (2.0 - s * r)
            scl = amp * r

            t0 = tar_ref[0, :, pl.ds(c0, chunk)].astype(jnp.float32)
            t1 = tar_ref[1, :, pl.ds(c0, chunk)].astype(jnp.float32)
            t2 = tar_ref[2, :, pl.ds(c0, chunk)].astype(jnp.float32)
            t3 = tar_ref[3, :, pl.ds(c0, chunk)].astype(jnp.float32)

            d0 = e0 * scl - t0
            d1 = e1 * scl - t1
            d2 = e2 * scl - t2
            d3 = e3 * scl - t3

            sq = (d0 * d0 + d1 * d1) + (d2 * d2 + d3 * d3)          # (6, chunk)
            loss = jnp.sqrt(jnp.sum(sq, axis=0, keepdims=True)) * _INV_SQRT_24
            out_ref[:, pl.ds(c0, chunk)] = loss                     # (1, chunk)
            return carry

        # fori_loop (not a static Python for) so live ranges are bounded per chunk.
        jax.lax.fori_loop(0, n_chunks, body, 0, unroll=False)

    return kernel


@partial(jax.jit, static_argnames=("tile_b",))
def test_soft_batch(pre, tar, *, tile_b=None):
    """pre, tar: (B, 25) arrays -> (B,) float32 per-sample loss."""
    B = pre.shape[0]
    if tile_b is None:
        tile_b = _pick_tile_b(B)
    assert tile_b % 128 == 0, "tile_b must be a multiple of 128 lanes"
    chunk = math.gcd(tile_b, 512)  # multiple of 128, divides tile_b
    b_pad = _round_up(B, tile_b)

    # Repack to member-major (4, 6, B): pre[j, 4*i + m] -> pre_p[m, i, j].
    # Under jit the slice+reshape+transpose+pad fuse into a single relayout
    # feeding the pallas_call (no separate extra HBM round-trip per op).
    pre_p = jnp.transpose(pre[:, :24].reshape(B, 6, 4), (2, 1, 0))
    tar_p = jnp.transpose(tar[:, :24].reshape(B, 6, 4), (2, 1, 0))
    if b_pad != B:
        pad = b_pad - B
        # Zero-padded columns give finite softmax values and are sliced away below.
        pre_p = jnp.pad(pre_p, ((0, 0), (0, 0), (0, pad)))
        tar_p = jnp.pad(tar_p, ((0, 0), (0, 0), (0, pad)))

    # Note: out[24] = relu(pre[24]) in the torch module never contributes to the
    # loss (only out[0:24] is used), so it is elided.
    out = pl.pallas_call(
        _make_kernel(tile_b, chunk),
        out_shape=jax.ShapeDtypeStruct((1, b_pad), jnp.float32),
        grid=(b_pad // tile_b,),
        in_specs=[
            pl.BlockSpec((4, 6, tile_b), lambda i: (0, 0, i)),
            pl.BlockSpec((4, 6, tile_b), lambda i: (0, 0, i)),
        ],
        out_specs=pl.BlockSpec((1, tile_b), lambda i: (0, i)),
        compiler_params=pltpu.CompilerParams(
            dimension_semantics=("parallel",),
            vmem_limit_bytes=32 * 1024 * 1024,
        ),
    )(pre_p, tar_p)

    return out[0, :B]


def _reference(pre, tar):
    """Pure-JAX reference mirroring the torch forward, for validation."""
    pre = pre.astype(jnp.float32)
    tar = tar.astype(jnp.float32)
    groups = pre[:, :24].reshape(pre.shape[0], 6, 4)
    soft = (3.0 * EXPAND) * jax.nn.softmax(groups, axis=-1)
    out24 = soft.reshape(pre.shape[0], 24)
    diff = out24 - tar[:, :24]
    return jnp.sqrt(jnp.mean(diff * diff, axis=-1))


if __name__ == "__main__":
    key = jax.random.PRNGKey(0)
    k1, k2 = jax.random.split(key)

    # Small primary case.
    B = 4
    pre = jax.random.normal(k1, (B, 25), dtype=jnp.float32)
    tar = jax.random.normal(k2, (B, 25), dtype=jnp.float32)
    loss = test_soft_batch(pre, tar)
    jax.block_until_ready(loss)
    ref = _reference(pre, tar)
    assert loss.shape == (B,), loss.shape
    assert jnp.allclose(loss, ref, atol=1e-5, rtol=1e-5), (loss, ref)

    # Batch not a multiple of 128 (partial / padded-lane path).
    B2 = 300
    k3, k4 = jax.random.split(k2)
    pre2 = jax.random.normal(k3, (B2, 25), dtype=jnp.float32)
    tar2 = jax.random.normal(k4, (B2, 25), dtype=jnp.float32)
    loss2 = test_soft_batch(pre2, tar2)
    jax.block_until_ready(loss2)
    assert loss2.shape == (B2,)
    assert jnp.allclose(loss2, _reference(pre2, tar2), atol=1e-5, rtol=1e-5)

    # Larger batch: exercises multi-step grid + in-kernel multi-chunk loop.
    B3 = 1500
    k5, k6 = jax.random.split(k4)
    pre3 = jax.random.normal(k5, (B3, 25), dtype=jnp.float32)
    tar3 = jax.random.normal(k6, (B3, 25), dtype=jnp.float32)
    loss3 = test_soft_batch(pre3, tar3)
    jax.block_until_ready(loss3)
    assert loss3.shape == (B3,)
    assert jnp.allclose(loss3, _reference(pre3, tar3), atol=1e-5, rtol=1e-5)

    print("KERNEL_OK")
</pallas_src>

<mosaic_0001>
module attributes {stable_mosaic.version = 11 : i64} {
  func.func @kernel(%arg0: i32, %arg1: memref<4x6x128xf32, #tpu.memory_space<vmem>>, %arg2: memref<4x6x128xf32, #tpu.memory_space<vmem>>, %arg3: memref<1x128xf32, #tpu.memory_space<vmem>>) attributes {dimension_semantics = [#tpu.dimension_semantics<parallel>], iteration_bounds = array<i64: 1>, scalar_prefetch = 0 : i64, scratch_operands = 0 : i64, tpu.core_type = #tpu.core_type<tc>, window_params = [{transform_indices = @transform_0, window_bounds = array<i64: 4, 6, 128>}, {transform_indices = @transform_1, window_bounds = array<i64: 4, 6, 128>}, {transform_indices = @transform_2, window_bounds = array<i64: 1, 128>}]} {
    %c0_i32 = arith.constant 0 : i32
    %c128_i32 = arith.constant 128 : i32
    %0 = arith.muli %c0_i32, %c128_i32 : i32
    %1 = tpu.assume_multiple %0, 128 : i32
    %c0 = arith.constant 0 : index
    %c0_0 = arith.constant 0 : index
    %2 = arith.index_cast %1 : i32 to index
    %3 = vector.load %arg1[%c0, %c0_0, %2] : memref<4x6x128xf32, #tpu.memory_space<vmem>>, vector<1x6x128xf32>
    %4 = vector.shape_cast %3 : vector<1x6x128xf32> to vector<6x128xf32>
    %c1 = arith.constant 1 : index
    %c0_1 = arith.constant 0 : index
    %5 = arith.index_cast %1 : i32 to index
    %6 = vector.load %arg1[%c1, %c0_1, %5] : memref<4x6x128xf32, #tpu.memory_space<vmem>>, vector<1x6x128xf32>
    %7 = vector.shape_cast %6 : vector<1x6x128xf32> to vector<6x128xf32>
    %c2 = arith.constant 2 : index
    %c0_2 = arith.constant 0 : index
    %8 = arith.index_cast %1 : i32 to index
    %9 = vector.load %arg1[%c2, %c0_2, %8] : memref<4x6x128xf32, #tpu.memory_space<vmem>>, vector<1x6x128xf32>
    %10 = vector.shape_cast %9 : vector<1x6x128xf32> to vector<6x128xf32>
    %c3 = arith.constant 3 : index
    %c0_3 = arith.constant 0 : index
    %11 = arith.index_cast %1 : i32 to index
    %12 = vector.load %arg1[%c3, %c0_3, %11] : memref<4x6x128xf32, #tpu.memory_space<vmem>>, vector<1x6x128xf32>
    %13 = vector.shape_cast %12 : vector<1x6x128xf32> to vector<6x128xf32>
    %14 = arith.maximumf %4, %7 : vector<6x128xf32>
    %15 = arith.maximumf %10, %13 : vector<6x128xf32>
    %16 = arith.maximumf %14, %15 : vector<6x128xf32>
    %17 = arith.subf %4, %16 : vector<6x128xf32>
    %18 = math.exp %17 : vector<6x128xf32>
    %19 = arith.subf %7, %16 : vector<6x128xf32>
    %20 = math.exp %19 : vector<6x128xf32>
    %21 = arith.subf %10, %16 : vector<6x128xf32>
    %22 = math.exp %21 : vector<6x128xf32>
    %23 = arith.subf %13, %16 : vector<6x128xf32>
    %24 = math.exp %23 : vector<6x128xf32>
    %25 = arith.addf %18, %20 : vector<6x128xf32>
    %26 = arith.addf %22, %24 : vector<6x128xf32>
    %27 = arith.addf %25, %26 : vector<6x128xf32>
    %28 = tpu.reciprocal %27 {approx = true} : vector<6x128xf32> -> vector<6x128xf32>
    %29 = arith.mulf %27, %28 : vector<6x128xf32>
    %cst = arith.constant 2.000000e+00 : f32
    %30 = vector.broadcast %cst : f32 to vector<6x128xf32>
    %31 = arith.subf %30, %29 : vector<6x128xf32>
    %32 = arith.mulf %28, %31 : vector<6x128xf32>
    %cst_4 = arith.constant 3.000000e+00 : f32
    %33 = vector.broadcast %cst_4 : f32 to vector<6x128xf32>
    %34 = arith.mulf %33, %32 : vector<6x128xf32>
    %c0_5 = arith.constant 0 : index
    %c0_6 = arith.constant 0 : index
    %35 = arith.index_cast %1 : i32 to index
    %36 = vector.load %arg2[%c0_5, %c0_6, %35] : memref<4x6x128xf32, #tpu.memory_space<vmem>>, vector<1x6x128xf32>
    %37 = vector.shape_cast %36 : vector<1x6x128xf32> to vector<6x128xf32>
    %c1_7 = arith.constant 1 : index
    %c0_8 = arith.constant 0 : index
    %38 = arith.index_cast %1 : i32 to index
    %39 = vector.load %arg2[%c1_7, %c0_8, %38] : memref<4x6x128xf32, #tpu.memory_space<vmem>>, vector<1x6x128xf32>
    %40 = vector.shape_cast %39 : vector<1x6x128xf32> to vector<6x128xf32>
    %c2_9 = arith.constant 2 : index
    %c0_10 = arith.constant 0 : index
    %41 = arith.index_cast %1 : i32 to index
    %42 = vector.load %arg2[%c2_9, %c0_10, %41] : memref<4x6x128xf32, #tpu.memory_space<vmem>>, vector<1x6x128xf32>
    %43 = vector.shape_cast %42 : vector<1x6x128xf32> to vector<6x128xf32>
    %c3_11 = arith.constant 3 : index
    %c0_12 = arith.constant 0 : index
    %44 = arith.index_cast %1 : i32 to index
    %45 = vector.load %arg2[%c3_11, %c0_12, %44] : memref<4x6x128xf32, #tpu.memory_space<vmem>>, vector<1x6x128xf32>
    %46 = vector.shape_cast %45 : vector<1x6x128xf32> to vector<6x128xf32>
    %47 = arith.mulf %18, %34 : vector<6x128xf32>
    %48 = arith.subf %47, %37 : vector<6x128xf32>
    %49 = arith.mulf %20, %34 : vector<6x128xf32>
    %50 = arith.subf %49, %40 : vector<6x128xf32>
    %51 = arith.mulf %22, %34 : vector<6x128xf32>
    %52 = arith.subf %51, %43 : vector<6x128xf32>
    %53 = arith.mulf %24, %34 : vector<6x128xf32>
    %54 = arith.subf %53, %46 : vector<6x128xf32>
    %55 = arith.mulf %48, %48 : vector<6x128xf32>
    %56 = arith.mulf %50, %50 : vector<6x128xf32>
    %57 = arith.addf %55, %56 : vector<6x128xf32>
    %58 = arith.mulf %52, %52 : vector<6x128xf32>
    %59 = arith.mulf %54, %54 : vector<6x128xf32>
    %60 = arith.addf %58, %59 : vector<6x128xf32>
    %61 = arith.addf %57, %60 : vector<6x128xf32>
    %cst_13 = arith.constant dense<0.000000e+00> : vector<128xf32>
    %62 = vector.multi_reduction <add>, %61, %cst_13 [0] : vector<6x128xf32> to vector<128xf32>
    %63 = vector.shape_cast %62 : vector<128xf32> to vector<1x128xf32>
    %64 = math.sqrt %63 : vector<1x128xf32>
    %cst_14 = arith.constant 0.204124153 : f32
    %65 = vector.broadcast %cst_14 : f32 to vector<1x128xf32>
    %66 = arith.mulf %64, %65 : vector<1x128xf32>
    %c0_15 = arith.constant 0 : index
    %67 = arith.index_cast %1 : i32 to index
    %68 = vector.load %arg3[%c0_15, %67] : memref<1x128xf32, #tpu.memory_space<vmem>>, vector<1x128xf32>
    tpu.vector_store %arg3[%c0_15, %67], %66 {strides = array<i32>} : memref<1x128xf32, #tpu.memory_space<vmem>>, vector<1x128xf32>,
    %c1_i32 = arith.constant 1 : i32
    return
  }
  func.func @transform_0(%arg0: i32) -> (i32, i32, i32) {
    %c0_i32 = arith.constant 0 : i32
    %c0_i32_0 = arith.constant 0 : i32
    %c0_i32_1 = arith.constant 0 : i32
    return %c0_i32, %c0_i32_0, %arg0 : i32, i32, i32
  }
  func.func @transform_1(%arg0: i32) -> (i32, i32, i32) {
    %c0_i32 = arith.constant 0 : i32
    %c0_i32_0 = arith.constant 0 : i32
    %c0_i32_1 = arith.constant 0 : i32
    return %c0_i32, %c0_i32_0, %arg0 : i32, i32, i32
  }
  func.func @transform_2(%arg0: i32) -> (i32, i32) {
    %c0_i32 = arith.constant 0 : i32
    %c0_i32_0 = arith.constant 0 : i32
    return %c0_i32, %arg0 : i32, i32
  }
}

</mosaic_0001>

<bundles_post_ra>
// kernel: test_soft_batch.1
= control target key start
LH: loop header
LB: loop body
LE: loop exit
PB: predicated region body
PF: predicated region fallthrough
CT: control target
= control target key end

     0   :  { %vm66_vm0 = vcmask 1045504   ;;  %s153_s0 = inlined_call_operand.vmem [shape: f32[4,6,128], index: 0, kind: input, shape index: {}]   ;;  %s154_s1 = inlined_call_operand.vmem [shape: f32[4,6,128], index: 1, kind: input, shape index: {}]   ;;  %s155_s2 = inlined_call_operand.vmem [shape: f32[1,128], index: 2, kind: output, shape index: {}]  }
   0x1   :  { %v11_v0 = vld [vmem:[%s153_s0] sm:$0x3f]  ;;  %v93_v1 = vld [vmem:[%s153_s0 + $0x8] sm:$0x3f]  ;;  %v94_v2 = vld [vmem:[%s153_s0 + $0x10] sm:$0x3f] }
   0x2   :  { %v95_v3 = vld [vmem:[%s153_s0 + $0x18] sm:$0x3f]  ;;  %v21_v4 = vmax.f32 %v11_v0, %v93_v1  ;;  %v44_v27 = vld [vmem:[%s154_s1] sm:$0x3f]  ;;  %v96_v28 = vld [vmem:[%s154_s1 + $0x8] sm:$0x3f] }
   0x3   :  { %v22_v5 = vmax.f32 %v94_v2, %v95_v3  ;;  %v97_v29 = vld [vmem:[%s154_s1 + $0x10] sm:$0x3f]  ;;  %v98_v30 = vld [vmem:[%s154_s1 + $0x18] sm:$0x3f] }
   0x5   :  { %v23_v6 = vmax.f32 %v21_v4, %v22_v5 }
   0x7   :  { %v24_v7 = vsub.f32 %v11_v0, %v23_v6  ;;  %v27_v8 = vsub.f32 %v93_v1, %v23_v6  ;;  %v30_v9 = vsub.f32 %v94_v2, %v23_v6  ;;  %v33_v10 = vsub.f32 %v95_v3, %v23_v6 }
   0x9   :  { %v25_v11 = vmul.f32 1.442695, %v24_v7  ;;  %v28_v12 = vmul.f32 1.442695, %v27_v8  ;;  %v31_v13 = vmul.f32 1.442695, %v30_v9 }
   0xa   :  { %v34_v14 = vmul.f32 1.442695, %v33_v10 }
   0xb   :  { %99 = vpow2.f32 %v25_v11 }
   0xc   :  { %101 = vpow2.f32 %v28_v12 }
   0xd   :  { %103 = vpow2.f32 %v31_v13 }
   0xe   :  { %105 = vpow2.f32 %v34_v14 }
  0x15   :  { %v100_v15 = vpop.eup %99 }
  0x16   :  { %v102_v16 = vpop.eup %101 }
  0x17   :  { %v104_v17 = vpop.eup %103  ;;  %v36_v18 = vadd.f32 %v102_v16, %v100_v15 }
  0x18   :  { %v106_v19 = vpop.eup %105 }
  0x19   :  { %v37_v20 = vadd.f32 %v106_v19, %v104_v17 }
  0x1b   :  { %v38_v21 = vadd.f32 %v37_v20, %v36_v18 }
  0x1d   :  { %107 = vrcp.f32 %v38_v21 }
  0x27   :  { %v108_v22 = vpop.eup %107 }
  0x28   :  { %v40_v23 = vmul.f32 %v108_v22, %v38_v21 }
  0x2a   :  { %v41_v24 = vsub.f32 2.0, %v40_v23 }
  0x2c   :  { %v42_v25 = vmul.f32 %v108_v22, %v41_v24 }
  0x2e   :  { %v43_v26 = vmul.f32 3.0, %v42_v25 }
  0x30   :  { %v51_v31 = vmul.f32 %v100_v15, %v43_v26  ;;  %v53_v32 = vmul.f32 %v102_v16, %v43_v26  ;;  %v55_v33 = vmul.f32 %v104_v17, %v43_v26  ;;  %v57_v34 = vmul.f32 %v106_v19, %v43_v26 }
  0x32   :  { %v52_v35 = vsub.f32 %v51_v31, %v44_v27  ;;  %v54_v36 = vsub.f32 %v53_v32, %v96_v28  ;;  %v56_v37 = vsub.f32 %v55_v33, %v97_v29  ;;  %v58_v38 = vsub.f32 %v57_v34, %v98_v30 }
  0x34   :  { %v59_v39 = vmul.f32 %v52_v35, %v52_v35  ;;  %v60_v40 = vmul.f32 %v54_v36, %v54_v36  ;;  %v62_v41 = vmul.f32 %v56_v37, %v56_v37  ;;  %v63_v42 = vmul.f32 %v58_v38, %v58_v38 }
  0x36   :  { %v61_v43 = vadd.f32 %v60_v40, %v59_v39  ;;  %v64_v44 = vadd.f32 %v63_v42, %v62_v41 }
  0x38   :  { %v65_v45 = vadd.f32 %v64_v44, %v61_v43 }
  0x3a   :  { %v67_v46 = vsel %vm66_vm0, %v65_v45, 0.0 }
  0x3b   :  { %v68_v47 = vrot.slane %v67_v46, 4 }
  0x3d   :  { %v69_v48 = vadd.f32 %v68_v47, %v67_v46 }
  0x3f   :  { %v70_v49 = vrot.slane %v69_v48, 2 }
  0x41   :  { %v71_v50 = vadd.f32 %v70_v49, %v69_v48 }
  0x43   :  { %v72_v51 = vrot.slane %v71_v50, 1 }
  0x45   :  { %v73_v52 = vadd.f32 %v72_v51, %v71_v50 }
  0x47   :  { %109 = vrsqrt.f32 %v73_v52  ;;  %vm76_vm1 = vcmp.eq.f32.partialorder %v73_v52, inf  ;;  %v79_v54 = vand.u32 2147483648, %v73_v52  ;;  %vm78_vm2 = vcmp.eq.f32.partialorder %v73_v52, 0.0 }
  0x51   :  { %v110_v53 = vpop.eup %109 }
  0x52   :  { %v75_v55 = vmul.f32 %v110_v53, %v73_v52 }
  0x54   :  { %v77_v56 = vsel %vm76_vm1, %v73_v52, %v75_v55 }
  0x55   :  { %v80_v57 = vsel %vm78_vm2, %v79_v54, %v77_v56 }
  0x56   :  { %v81_v58 = vmul.f32 0.20412415, %v80_v57 }
  0x58   :  { %82 = vst [vmem:[%s155_s2] sm:$0x1] %v81_v58 }

</bundles_post_ra>
